<compile_context>
chip_gen: v6e
topology: v6e:2x2x1
jax: 0.10.0
libtpu: 0.0.40
codegen_flags: <defaults>
</compile_context>

<pallas_src>
import jax
import jax.numpy as jnp
from jax.experimental import pallas as pl
from jax.experimental.pallas import tpu as pltpu


def rnn_step_kernel(xaug_ref, wih_aug_ref, wfc_aug_ref, out_ref):
    """Single tanh-RNN step (zero initial hidden) + Linear head.

    xaug_ref    : (1, D+1)   = [x, 1]
    wih_aug_ref : (H, D+1)   = [W_ih | (b_ih + b_hh)]
    wfc_aug_ref : (H+1, O)   = [W_fc^T ; b_fc]
    out_ref     : (1, O)
    """
    H = wih_aug_ref.shape[0]

    # Hidden GEMV on VPU + XLU:
    #   (H, D+1) * (1, D+1) --broadcast--> (H, D+1) --lane-reduce--> (H, 1)
    # The fused RNN bias rides along as the last column (x_aug's trailing 1).
    pre = jnp.sum(wih_aug_ref[...] * xaug_ref[...], axis=1, keepdims=True)
    h = jnp.tanh(pre)                                            # (H, 1)

    # FC-head GEMV:
    #   (H, 1) * (H, O) --broadcast--> (H, O) --sublane-reduce--> (1, O)
    # The FC bias is the last row of wfc_aug.
    out_ref[...] = (jnp.sum(h * wfc_aug_ref[:H, :], axis=0, keepdims=True)
                    + wfc_aug_ref[H:H + 1, :])                   # (1, O)


# Whole-array, VMEM-resident operand (no blocking / pipelining machinery).
_VMEM_SPEC = pl.BlockSpec(memory_space=pltpu.MemorySpace.VMEM)


def pack_params(w_ih, w_hh, b_ih, b_hh, w_fc, b_fc):
    """One-time repack of PyTorch-layout params into the 2-tensor kernel layout.

    W_hh is dropped: the module always multiplies it by a zero hidden state.
    """
    del w_hh
    hidden_dim = w_ih.shape[0]
    output_dim = w_fc.shape[0]
    b_rnn = (b_ih + b_hh).reshape(hidden_dim, 1)                 # fused RNN bias
    wih_aug = jnp.concatenate([w_ih, b_rnn], axis=1)             # (H, D+1)
    wfc_aug = jnp.concatenate([w_fc.T, b_fc.reshape(1, output_dim)],
                              axis=0)                            # (H+1, O)
    return (wih_aug, wfc_aug)


def rnn_forward(x, packed_params):
    """x: (input_dim,) float32 -> (output_dim,) float32"""
    wih_aug, wfc_aug = packed_params
    output_dim = wfc_aug.shape[1]

    # Augment x with the constant 1 that picks up the fused RNN bias column.
    x_aug = jnp.concatenate([x, jnp.ones((1,), x.dtype)]).reshape(1, -1)

    out = pl.pallas_call(
        rnn_step_kernel,
        out_shape=jax.ShapeDtypeStruct((1, output_dim), jnp.float32),
        in_specs=[_VMEM_SPEC, _VMEM_SPEC, _VMEM_SPEC],
        out_specs=_VMEM_SPEC,
    )(x_aug, wih_aug, wfc_aug)

    return out.reshape(output_dim)


def init_params(key, input_dim, hidden_dim, output_dim):
    """Deterministic parameter init matching nn.RNN / nn.Linear shapes."""
    k = jax.random.split(key, 6)
    s_rnn = 1.0 / jnp.sqrt(hidden_dim)
    s_fc = 1.0 / jnp.sqrt(hidden_dim)
    w_ih = jax.random.uniform(k[0], (hidden_dim, input_dim), jnp.float32, -s_rnn, s_rnn)
    w_hh = jax.random.uniform(k[1], (hidden_dim, hidden_dim), jnp.float32, -s_rnn, s_rnn)
    b_ih = jax.random.uniform(k[2], (hidden_dim,), jnp.float32, -s_rnn, s_rnn)
    b_hh = jax.random.uniform(k[3], (hidden_dim,), jnp.float32, -s_rnn, s_rnn)
    w_fc = jax.random.uniform(k[4], (output_dim, hidden_dim), jnp.float32, -s_fc, s_fc)
    b_fc = jax.random.uniform(k[5], (output_dim,), jnp.float32, -s_fc, s_fc)
    return (w_ih, w_hh, b_ih, b_hh, w_fc, b_fc)


def reference_forward(x, params):
    """Pure-JAX reference of the original PyTorch math (correctness check)."""
    w_ih, w_hh, b_ih, b_hh, w_fc, b_fc = params
    h0 = jnp.zeros((w_hh.shape[0],), jnp.float32)
    h1 = jnp.tanh(x @ w_ih.T + b_ih + h0 @ w_hh.T + b_hh)
    return h1 @ w_fc.T + b_fc


if __name__ == "__main__":
    input_dim, hidden_dim, output_dim = 16, 32, 8

    key = jax.random.PRNGKey(0)
    kp, kx = jax.random.split(key)
    torch_params = init_params(kp, input_dim, hidden_dim, output_dim)
    packed = pack_params(*torch_params)          # one-time layout pack
    x = jax.random.normal(kx, (input_dim,), jnp.float32)

    out = rnn_forward(x, packed)
    out = jax.block_until_ready(out)

    ref = reference_forward(x, torch_params)
    assert out.shape == (output_dim,)
    assert jnp.allclose(out, ref, atol=1e-5, rtol=1e-5)

    print("KERNEL_OK")
</pallas_src>

<mosaic_0001>
module attributes {stable_mosaic.version = 11 : i64} {
  func.func @rnn_step_kernel(%arg0: memref<1x17xf32, #tpu.memory_space<vmem>>, %arg1: memref<32x17xf32, #tpu.memory_space<vmem>>, %arg2: memref<33x8xf32, #tpu.memory_space<vmem>>, %arg3: memref<1x8xf32, #tpu.memory_space<vmem>>) attributes {dimension_semantics = [], scalar_prefetch = 0 : i64, scratch_operands = 0 : i64, tpu.core_type = #tpu.core_type<tc>} {
    %c0 = arith.constant 0 : index
    %c0_0 = arith.constant 0 : index
    %0 = vector.load %arg1[%c0, %c0_0] : memref<32x17xf32, #tpu.memory_space<vmem>>, vector<32x17xf32>
    %c0_1 = arith.constant 0 : index
    %c0_2 = arith.constant 0 : index
    %1 = vector.load %arg0[%c0_1, %c0_2] : memref<1x17xf32, #tpu.memory_space<vmem>>, vector<1x17xf32>
    %2 = vector.broadcast %1 : vector<1x17xf32> to vector<32x17xf32>
    %3 = arith.mulf %0, %2 : vector<32x17xf32>
    %cst = arith.constant dense<0.000000e+00> : vector<32xf32>
    %4 = vector.multi_reduction <add>, %3, %cst [1] : vector<32x17xf32> to vector<32xf32>
    %5 = vector.shape_cast %4 : vector<32xf32> to vector<32x1xf32>
    %6 = math.tanh %5 : vector<32x1xf32>
    %c0_3 = arith.constant 0 : index
    %c0_4 = arith.constant 0 : index
    %7 = vector.load %arg2[%c0_3, %c0_4] : memref<33x8xf32, #tpu.memory_space<vmem>>, vector<32x8xf32>
    %8 = vector.broadcast %6 : vector<32x1xf32> to vector<32x8xf32>
    %9 = arith.mulf %8, %7 : vector<32x8xf32>
    %cst_5 = arith.constant dense<0.000000e+00> : vector<8xf32>
    %10 = vector.multi_reduction <add>, %9, %cst_5 [0] : vector<32x8xf32> to vector<8xf32>
    %11 = vector.shape_cast %10 : vector<8xf32> to vector<1x8xf32>
    %c32 = arith.constant 32 : index
    %c0_6 = arith.constant 0 : index
    %12 = vector.load %arg2[%c32, %c0_6] : memref<33x8xf32, #tpu.memory_space<vmem>>, vector<1x8xf32>
    %13 = arith.addf %11, %12 : vector<1x8xf32>
    %c0_7 = arith.constant 0 : index
    %c0_8 = arith.constant 0 : index
    %14 = vector.load %arg3[%c0_7, %c0_8] : memref<1x8xf32, #tpu.memory_space<vmem>>, vector<1x8xf32>
    tpu.vector_store %arg3[%c0_7, %c0_8], %13 {strides = array<i32>} : memref<1x8xf32, #tpu.memory_space<vmem>>, vector<1x8xf32>,
    return
  }
}

</mosaic_0001>

<bundles_post_ra>
// kernel: tpu_custom_call.1
= control target key start
LH: loop header
LB: loop body
LE: loop exit
PB: predicated region body
PF: predicated region fallthrough
CT: control target
= control target key end

     0   :  { %vm30_vm0 = vcmask 138240   ;;  %s173_s0 = inlined_call_operand.vmem [shape: f32[1,17], index: 0, kind: input, shape index: {}]   ;;  %s174_s1 = inlined_call_operand.vmem [shape: f32[32,17], index: 1, kind: input, shape index: {}]   ;;  %s175_s2 = inlined_call_operand.vmem [shape: f32[33,8], index: 2, kind: input, shape index: {}]   ;;  %s176_s3 = inlined_call_operand.hbm [shape: f32[1,8], index: 3, kind: output, shape index: {}]  }
   0x1   :  { %v15_v0 = vld [vmem:[%s174_s1] sm:$0xff]  ;;  %v17_v2 = vld [vmem:[%s174_s1 + $0x10] sm:$0xff]  ;;  %v16_v5 = vld [vmem:[%s174_s1 + $0x8] sm:$0xff] }
   0x2   :  { %v87_v1 = vld [vmem:[%s173_s0] ss:$0 sm:$0xff]  ;;  %v18_v6 = vld [vmem:[%s174_s1 + $0x18] sm:$0xff] }
   0x3   :  { %v26_v3 = vmul.f32 %v87_v1, %v15_v0  ;;  %v28_v4 = vmul.f32 %v87_v1, %v17_v2  ;;  %v27_v7 = vmul.f32 %v87_v1, %v16_v5  ;;  %v29_v8 = vmul.f32 %v87_v1, %v18_v6 }
   0x4   :  { %8 = vsyncpa [#allocation3], 0  ;;  %v47_v18 = vld [vmem:[%s175_s2] sm:$0xff]  ;;  %v49_v20 = vld [vmem:[%s175_s2 + $0x10] sm:$0xff]  ;;  %vm55_vm1 = vcmask 64512   ;;  %s119_s30 = smov [#allocation2]  }
   0x5   :  { %v31_v9 = vsel %vm30_vm0, %v26_v3, 0.0  ;;  %v37_v10 = vsel %vm30_vm0, %v28_v4, 0.0  ;;  %v34_v11 = vsel %vm30_vm0, %v27_v7, 0.0  ;;  %v40_v12 = vsel %vm30_vm0, %v29_v8, 0.0  ;;  %v48_v21 = vld [vmem:[%s175_s2 + $0x8] sm:$0xff]  ;;  %v50_v23 = vld [vmem:[%s175_s2 + $0x18] sm:$0xff] }
   0x6   :  { %32 = vadd.xlane.f32.xlu0 %v31_v9  ;;  %38 = vadd.xlane.f32.xlu1 %v37_v10  ;;  %v69_v41 = vld [vmem:[%s175_s2 + $0x20] sm:$0x1]  ;;  %s79_s4 = sshll.u32 %s119_s30, 4  ;;  %vm71_vm2 = vcmask 57344   ;;  %s80_s4 = int_to_ptr.vmem [resolvable:$true] %s79_s4 }
   0x7   :  { %s97_s5 = scalar_lea.vmem %s80_s4, 16  ;;  %s101_s6 = scalar_lea.vmem %s80_s4, 32 }
   0x8   :  { %p98_p0 = scmp.ne.s32.totalorder %s80_s4, %s97_s5  ;;  %p102_p1 = scmp.lt.s32.totalorder %s80_s4, %s80_s4 }
   0x9   :  { %p103_p2 = scmp.lt.s32.totalorder %s101_s6, %s97_s5 }
   0xa   :  { %35 = vadd.xlane.f32.xlu0 %v34_v11  ;;  %41 = vadd.xlane.f32.xlu1 %v40_v12 }
   0xb   :  { %p104_p3 = por %p103_p2, %p102_p1 }
   0xd   :  { %p105_p4 = pnand %p104_p3, %p98_p0 }
  0x8f   :  { %v33_v13 = vpop.xlane.xlu0 %32  ;;  %v39_v14 = vpop.xlane.xlu1 %38 }
  0x90   :  { %89 = vtanh.f32 %v33_v13 }
  0x91   :  { %91 = vtanh.f32 %v39_v14 }
  0x93   :  { %v36_v15 = vpop.xlane.xlu0 %35  ;;  %v42_v16 = vpop.xlane.xlu1 %41 }
  0x94   :  { %93 = vtanh.f32 %v36_v15 }
  0x95   :  { %95 = vtanh.f32 %v42_v16 }
  0x9d   :  { %v90_v17 = vpop.eup %89 }
  0x9e   :  { %v92_v19 = vpop.eup %91  ;;  %v51_v22 = vmul.f32 %v90_v17, %v47_v18 }
  0x9f   :  { %v53_v26 = vmul.f32 %v92_v19, %v49_v20 }
  0xa0   :  { %v56_v29 = vsel %vm55_vm1, %v51_v22, 0.0 }
  0xa1   :  { %v94_v24 = vpop.eup %93  ;;  %v59_v32 = vsel %vm55_vm1, %v53_v26, 0.0 }
  0xa2   :  { %v96_v25 = vpop.eup %95  ;;  %v52_v27 = vmul.f32 %v94_v24, %v48_v21 }
  0xa3   :  { %v54_v28 = vmul.f32 %v96_v25, %v50_v23 }
  0xa4   :  { %v57_v30 = vsel %vm55_vm1, %v52_v27, 0.0 }
  0xa5   :  { %v58_v31 = vadd.f32 %v57_v30, %v56_v29  ;;  %v61_v33 = vsel %vm55_vm1, %v54_v28, 0.0 }
  0xa7   :  { %v60_v34 = vadd.f32 %v59_v32, %v58_v31 }
  0xa9   :  { %v62_v35 = vadd.f32 %v61_v33, %v60_v34 }
  0xab   :  { %v63_v36 = vrot.slane %v62_v35, 4 }
  0xad   :  { %v64_v37 = vadd.f32 %v63_v36, %v62_v35 }
  0xaf   :  { %v65_v38 = vrot.slane %v64_v37, 2 }
  0xb1   :  { %v66_v39 = vadd.f32 %v65_v38, %v64_v37 }
  0xb3   :  { %v67_v40 = vrot.slane %v66_v39, 1 }
  0xb5   :  { %v68_v42 = vadd.f32 %v67_v40, %v66_v39 }
  0xb7   :  { %v70_v43 = vadd.f32 %v69_v41, %v68_v42 }
  0xb9   :  { %72 = vst.msk [vmem:[#allocation2] sm:$0x1] %vm71_vm2, %v70_v43 }
  0xba   :  { %108 = shalt.err (!%p105_p4)
}
  0xbb   :  { %82 = dma.vmem_to_hbm [thread:$0]  %s80_s4, 16, %s176_s3, [#allocation3]  }
  0xbc   :  { %117 = dma.done.wait [#allocation3], 16  }
  0xbd   :  { %118 = vsyncadd [#allocation3], 4294967280 }
  0xbe   :  { %86 = vsyncpa [#allocation3], 1 }

</bundles_post_ra>
